<compile_context>
chip_gen: v7x
topology: tpu7x:2x2x1
jax: 0.10.0
libtpu: 0.0.40
codegen_flags: <defaults>
</compile_context>

<pallas_src>
import jax
import jax.numpy as jnp
from jax.experimental import pallas as pl
from jax.experimental.pallas import tpu as pltpu


# ---------------------------------------------------------------------------
# Path 1: zero-copy identity (output aliases the input buffer).
# ---------------------------------------------------------------------------
def _identity_alias_kernel(x_hbm_ref, o_hbm_ref):
    # nn.Identity performs zero compute; output aliases input, nothing to move.
    del x_hbm_ref, o_hbm_ref


def identity(x):
    """nn.Identity forward: y = x, with the output buffer aliasing the input.

    NOTE: only zero-cost when the caller donates `x`
    (jax.jit(..., donate_argnums=...)); without donation XLA inserts a
    defensive copy before the aliased call. Prefer this (or simply returning x)
    over identity_copy whenever a distinct materialized buffer is not required.
    """
    return pl.pallas_call(
        _identity_alias_kernel,
        out_shape=jax.ShapeDtypeStruct(x.shape, x.dtype),
        in_specs=[pl.BlockSpec(memory_space=pl.ANY)],   # raw HBM ref, no auto-DMA
        out_specs=pl.BlockSpec(memory_space=pl.ANY),
        input_output_aliases={0: 0},
    )(x)


# ---------------------------------------------------------------------------
# Path 2: explicit copy via direct HBM->HBM DMA (no VMEM staging).
# ---------------------------------------------------------------------------
_CHUNK_THRESHOLD_BYTES = 4 * 1024 * 1024   # only chunk when the copy is large
_MAX_CHUNKS = 4


def _pick_num_chunks(shape, nbytes):
    """Static chunk count along axis 0 (1..4) to overlap DMA issue latency."""
    if len(shape) == 0 or nbytes < _CHUNK_THRESHOLD_BYTES:
        return 1
    dim0 = int(shape[0])
    for c in (_MAX_CHUNKS, 3, 2):
        if dim0 % c == 0:
            return c
    return 1


def identity_copy(x):
    """Explicit pass-through copy: direct HBM->HBM DMA(s), zero VMEM footprint."""
    itemsize = jnp.dtype(x.dtype).itemsize
    nbytes = int(x.size) * itemsize
    nchunks = _pick_num_chunks(x.shape, nbytes)
    chunk_rows = (int(x.shape[0]) // nchunks) if nchunks > 1 else 0

    def kernel(x_hbm, o_hbm, sem):
        if nchunks == 1:
            cp = pltpu.make_async_copy(x_hbm, o_hbm, sem.at[0])
            cp.start()
            cp.wait()
        else:
            # Static, evenly-divided slices along axis 0; issue all DMAs, then
            # wait on all — they stream concurrently on the DMA engines.
            copies = [
                pltpu.make_async_copy(
                    x_hbm.at[pl.ds(c * chunk_rows, chunk_rows)],
                    o_hbm.at[pl.ds(c * chunk_rows, chunk_rows)],
                    sem.at[c],
                )
                for c in range(nchunks)
            ]
            for cp in copies:
                cp.start()
            for cp in copies:
                cp.wait()

    return pl.pallas_call(
        kernel,
        out_shape=jax.ShapeDtypeStruct(x.shape, x.dtype),
        in_specs=[pl.BlockSpec(memory_space=pl.ANY)],    # raw HBM ref
        out_specs=pl.BlockSpec(memory_space=pl.ANY),     # raw HBM ref
        scratch_shapes=[pltpu.SemaphoreType.DMA((nchunks,))],
        cost_estimate=pl.CostEstimate(
            flops=0,
            transcendentals=0,
            bytes_accessed=2 * nbytes,                   # pure read + write
        ),
    )(x)


if __name__ == "__main__":
    key = jax.random.PRNGKey(0)
    # Small NCHW-style activation: (batch=2, channels=4, H=16, W=16)
    x = jax.random.normal(key, (2, 4, 16, 16), dtype=jnp.float32)

    # Preferred zero-copy path.
    y = identity(x)
    jax.block_until_ready(y)
    assert y.shape == x.shape, (y.shape, x.shape)
    assert y.dtype == x.dtype, (y.dtype, x.dtype)
    assert bool(jnp.all(y == x)), "Identity (aliased) output mismatch"

    # Explicit HBM->HBM DMA copy path.
    y2 = identity_copy(x)
    jax.block_until_ready(y2)
    assert y2.shape == x.shape, (y2.shape, x.shape)
    assert y2.dtype == x.dtype, (y2.dtype, x.dtype)
    assert bool(jnp.all(y2 == x)), "Identity (copy) output mismatch"

    print("KERNEL_OK")
</pallas_src>

<mosaic_0001>
module attributes {stable_mosaic.version = 11 : i64} {
  func.func @_identity_alias_kernel(%arg0: memref<2x4x16x16xf32, #tpu.memory_space<any>>, %arg1: memref<2x4x16x16xf32, #tpu.memory_space<any>>) attributes {dimension_semantics = [], scalar_prefetch = 0 : i64, scratch_operands = 0 : i64, tpu.core_type = #tpu.core_type<tc>} {
    return
  }
}

</mosaic_0001>

<bundles_post_ra>
// kernel: tpu_custom_call.1
= control target key start
LH: loop header
LB: loop body
LE: loop exit
PB: predicated region body
PF: predicated region fallthrough
CT: control target
= control target key end

     0   :  { %s16_s0 = inlined_call_operand.hbm [shape: f32[2,4,16,16], index: 0, kind: input, shape index: {}, may-alias: {0,1}]   ;;  %s17_s1 = inlined_call_operand.hbm [shape: f32[2,4,16,16], index: 1, kind: output, shape index: {}, may-alias: {0,1}]  }

</bundles_post_ra>
